<compile_context>
chip_gen: v7x
topology: tpu7x:2x2x1
jax: 0.10.0
libtpu: 0.0.40
codegen_flags: <defaults>
</compile_context>

<pallas_src>
import jax
import jax.numpy as jnp
from jax import lax
from jax.experimental import pallas as pl
from jax.experimental.pallas import tpu as pltpu

INDEX_MONKEY, INDEX_BANANA, INDEX_DANGER, INDEX_BARRIER = 0, 1, 2, 3
DM_CHANNELS = (INDEX_MONKEY, INDEX_BANANA, INDEX_DANGER)   # desire-map channels
PF_CHANNELS = (INDEX_BARRIER, INDEX_DANGER)                # path-finder channels
SIGHT = 11
FLAT = SIGHT * SIGHT      # 121 flattened spatial positions
LANES = 128               # lane-padded width of every flattened map
ROW_FOOD = 4              # spare sublane of the state slab carrying the food scalar

# ---- params-slab row map (everything the kernel needs besides the state slab) ----
R_FW_W, R_FW_B = 0, 1       # FoodWeight gate W / B, DM channels on sublanes 0-2
R_DM_T = 2                  # 9  rows: DM_conv  taps (3x3), sublanes 0-2 = input channel
R_PF1_T = 11                # 9  rows: PF_conv1 taps (3x3), sublanes 0-3 barrier, 4-7 danger
R_PF2_T = 20                # 25 rows: PF_conv2 taps (5x5), sublanes 0-3 = input channel
R_PF1_B = 45                # PF_conv1 bias on sublanes 0-3
R_PF2_B = 46                # PF_conv2 bias (lane/row broadcast)
R_EV_W1DM, R_EV_W1PF = 47, 48   # Linear(50,8) weights scattered onto the lane frame
R_EV_W2T = 49               # Linear(8,5) weights (transposed) on lanes 0-4
R_EV_B1, R_EV_B2 = 50, 51   # EV biases (lane-0 column / row-0 lanes 0-4)
N_TAPS = 44
N_PROWS = 52

# Roll-wrap budget: the deepest source lane any *consumed* output reads is
#   DM : max(dm_pos) + (2*11+2)              = 96 + 24      = 120
#   PF : max(pf_pos) + (4*11+4) + (2*11+2)   = 48 + 48 + 24 = 120
# which must stay inside the FLAT genuine lanes so pltpu.roll wrap-around never
# feeds a real output.  Revisit if SIGHT / kernel sizes / dm_pos / pf_pos change.
assert 22 * 4 + 2 * 4 + (2 * SIGHT + 2) <= FLAT - 1
assert (4 * SIGHT + 4) + (4 * SIGHT + 4) + (2 * SIGHT + 2) <= FLAT - 1
assert FLAT <= LANES


def _shifted(x, s):
    """Lane view y[:, l] = x[:, l + s]; wrapped lanes only reach don't-care outputs."""
    return x if s == 0 else pltpu.roll(x, LANES - s, axis=1)


def brainv1_kernel(vis_ref, p_ref, q_ref):
    vis = vis_ref[0]                                        # (8,128): rows 0-3 vision, row 4 food
    food = vis[ROW_FOOD:ROW_FOOD + 1]                       # (1,128) lane-broadcast food scalar

    # ---------------- DM (desire map) path ----------------
    # TODO(synk): layers.FoodWeight source is unavailable; implemented as a
    # per-element food-gated affine:  out[c] = x[c] * (food * W[c] + B[c]).
    gate = food * p_ref[R_FW_W] + p_ref[R_FW_B]             # (8,128); rows 3-7 stay exactly 0
    dm_in = jnp.maximum(vis * gate, 0.0)                    # relu(DM_weighted), rows 0-2 live

    # DM_conv = Conv2d(3, 1, 3, stride=2): one roll per tap (shared by the 3 input
    # channels on sublanes) * a lane-broadcast per-sublane weight row (pure VPU).
    dm_parts = []
    for ki in range(3):
        part = _shifted(dm_in, 11 * ki) * p_ref[R_DM_T + 3 * ki]
        for kj in (1, 2):
            part = part + _shifted(dm_in, 11 * ki + kj) * p_ref[R_DM_T + 3 * ki + kj]
        dm_parts.append(part)
    dm_acc = jnp.sum(dm_parts[0] + dm_parts[1] + dm_parts[2],
                     axis=0, keepdims=True)                 # (1,128): stride-1 conv at every lane
    # The stride-2 selection + DM conv bias are folded into the EV weights/bias.

    # ---------------- PF (path finding) path ----------------
    # Barrier on sublanes 0-3 and danger on 4-7 so one roll per tap serves all
    # four PF_conv1 output channels for both input channels.
    pf_in = jnp.concatenate(
        [jnp.broadcast_to(vis[INDEX_BARRIER:INDEX_BARRIER + 1], (4, LANES)),
         jnp.broadcast_to(vis[INDEX_DANGER:INDEX_DANGER + 1], (4, LANES))], axis=0)
    pf_parts = []
    for ki in range(3):
        part = _shifted(pf_in, 11 * ki) * p_ref[R_PF1_T + 3 * ki]
        for kj in (1, 2):
            part = part + _shifted(pf_in, 11 * ki + kj) * p_ref[R_PF1_T + 3 * ki + kj]
        pf_parts.append(part)
    acc1 = pf_parts[0] + pf_parts[1] + pf_parts[2]          # (8,128)
    pre = acc1[0:4] + acc1[4:8] + p_ref[R_PF1_B][0:4]       # fold input channels + bias -> (4,128)
    walls = 0.5 * jnp.tanh(0.5 * pre) + 0.5                 # F.sigmoid via the EUP tanh

    # PF_conv2 = Conv2d(4, 1, 5): 25 taps, 4 input channels on sublanes.
    p2_parts = []
    for ki in range(5):
        part = _shifted(walls, 11 * ki) * p_ref[R_PF2_T + 5 * ki][0:4]
        for kj in (1, 2, 3, 4):
            part = part + _shifted(walls, 11 * ki + kj) * p_ref[R_PF2_T + 5 * ki + kj][0:4]
        p2_parts.append(part)
    acc2 = (p2_parts[0] + p2_parts[1]) + (p2_parts[2] + p2_parts[3]) + p2_parts[4]
    pf_map = jnp.maximum(jnp.sum(acc2, axis=0, keepdims=True) + p_ref[R_PF2_B][0:1], 0.0)

    # ---------------- EV (evaluator) head: pure VPU + one lane + one sublane reduce ----
    prod = dm_acc * p_ref[R_EV_W1DM] + pf_map * p_ref[R_EV_W1PF]                  # (8,128)
    h = jnp.maximum(jnp.sum(prod + p_ref[R_EV_B1], axis=1, keepdims=True), 0.0)   # (8,1)
    q = jnp.sum(h * p_ref[R_EV_W2T] + p_ref[R_EV_B2], axis=0, keepdims=True)      # (1,128)
    q_ref[...] = jnp.broadcast_to(jnp.maximum(q, 0.0), (1, 8, LANES))


def make_param_slab(params):
    """Builds the cached (52, 8, 128) f32 parameter slab.

    Call ONCE per parameter update and reuse across forward calls; the per-call
    wrapper then only relays (food, vision).  Zero-initialised regions (FoodWeight
    rows 3-7, tap sublanes beyond each conv's channels, EV lanes >= 121) are part
    of the correctness contract and must stay zero.
    """
    f32 = jnp.float32

    def lane_pad(x):               # (..., 121) -> (..., 128)
        return jnp.pad(x, [(0, 0)] * (x.ndim - 1) + [(0, LANES - FLAT)])

    fw_w = jnp.zeros((8, LANES), f32).at[0:3].set(lane_pad(params["fw_w"].reshape(3, FLAT)))
    fw_b = jnp.zeros((8, LANES), f32).at[0:3].set(lane_pad(params["fw_b"].reshape(3, FLAT)))

    # Per-tap, per-sublane conv weight columns, pre-broadcast across the lanes.
    taps = jnp.zeros((N_TAPS, 8), f32)
    taps = taps.at[0:9, 0:3].set(params["dm_w"][0].transpose(1, 2, 0).reshape(9, 3))
    taps = taps.at[9:18, 0:4].set(params["pf1_w"][:, 0].transpose(1, 2, 0).reshape(9, 4))
    taps = taps.at[9:18, 4:8].set(params["pf1_w"][:, 1].transpose(1, 2, 0).reshape(9, 4))
    taps = taps.at[18:43, 0:4].set(params["pf2_w"][0].transpose(1, 2, 0).reshape(25, 4))
    taps = taps.at[43, 0:4].set(params["pf1_b"])
    taps_b = jnp.broadcast_to(taps[:, :, None], (N_TAPS, 8, LANES))

    pf2_b_row = jnp.full((8, LANES), params["pf2_b"][0], f32)

    # EV head: scatter Linear(50,8) onto the lane frame; fold stride-2 + DM bias.
    w1 = params["ev1_w"]                                               # (8, 50)
    dm_pos = jnp.array([22 * r + 2 * c for r in range(5) for c in range(5)])
    pf_pos = jnp.array([11 * r + c for r in range(5) for c in range(5)])
    w1dm_s = jnp.zeros((8, LANES), f32).at[:, dm_pos].set(w1[:, :25])
    w1pf_s = jnp.zeros((8, LANES), f32).at[:, pf_pos].set(w1[:, 25:])
    ev2wT = jnp.zeros((8, LANES), f32).at[:, 0:5].set(params["ev2_w"].T)
    ev1b_eff = params["ev1_b"] + params["dm_b"][0] * jnp.sum(w1[:, :25], axis=1)
    ev1b = jnp.zeros((8, LANES), f32).at[:, 0].set(ev1b_eff)           # lane 0 -> summed in
    ev2b = jnp.zeros((8, LANES), f32).at[0, 0:5].set(params["ev2_b"])  # row 0  -> summed in

    pslab = jnp.concatenate(
        [fw_w[None], fw_b[None], taps_b, pf2_b_row[None],
         w1dm_s[None], w1pf_s[None], ev2wT[None], ev1b[None], ev2b[None]], axis=0)
    assert pslab.shape == (N_PROWS, 8, LANES)
    return pslab


def make_state_slab(food, vision):
    """Per-call relayout: food (B,), vision (B,4,11,11) -> (B,8,128) state slab."""
    B = vision.shape[0]
    v = vision.astype(jnp.float32).reshape(B, 4, FLAT)
    food = jnp.asarray(food, jnp.float32)
    slab = jnp.zeros((B, 8, LANES), jnp.float32)
    slab = slab.at[:, 0:4, :FLAT].set(v)
    slab = slab.at[:, ROW_FOOD, :].set(jnp.broadcast_to(food[:, None], (B, LANES)))
    return slab


@jax.jit
def brainv1_forward_batched(food, vision, pslab):
    """Batched forward: food (B,), vision (B,4,11,11), cached pslab -> Qs (B,5)."""
    B = vision.shape[0]
    vslab = make_state_slab(food, vision)
    grid_spec = pltpu.PrefetchScalarGridSpec(
        num_scalar_prefetch=0,
        grid=(B,),
        in_specs=[
            pl.BlockSpec((1, 8, LANES), lambda b: (b, 0, 0)),          # per-sample state
            pl.BlockSpec((N_PROWS, 8, LANES), lambda b: (0, 0, 0)),    # resident params slab
        ],
        out_specs=pl.BlockSpec((1, 8, LANES), lambda b: (b, 0, 0)),
    )
    q = pl.pallas_call(
        brainv1_kernel,
        out_shape=jax.ShapeDtypeStruct((B, 8, LANES), jnp.float32),
        grid_spec=grid_spec,
        compiler_params=pltpu.CompilerParams(
            dimension_semantics=("parallel",)),   # v7x: shard the batch over both TCs
    )(vslab, pslab)
    return q[:, 0, :5]                                      # (B, 5) Qs


def brainv1_forward(food, vision, pslab):
    """Single-sample forward keeping the module's s=(food, vision) semantics."""
    q = brainv1_forward_batched(jnp.asarray(food, jnp.float32).reshape(1),
                                vision[None], pslab)
    return q[0]


def brainv1_reference(food, vision, params):
    """Plain-JAX reference of the PyTorch forward (for a numerical check)."""
    hi = lax.Precision.HIGHEST
    dm_ch = vision[jnp.array(DM_CHANNELS)]
    dm_weighted = jnp.maximum(dm_ch * (food * params["fw_w"] + params["fw_b"]), 0.0)
    dm = lax.conv_general_dilated(dm_weighted[None], params["dm_w"], (2, 2), "VALID",
                                  dimension_numbers=("NCHW", "OIHW", "NCHW"),
                                  precision=hi) + params["dm_b"].reshape(1, 1, 1, 1)
    pf_ch = vision[jnp.array(PF_CHANNELS)].astype(jnp.float32)
    pf1 = lax.conv_general_dilated(pf_ch[None], params["pf1_w"], (1, 1), "VALID",
                                   dimension_numbers=("NCHW", "OIHW", "NCHW"),
                                   precision=hi) + params["pf1_b"].reshape(1, 4, 1, 1)
    pf1 = jax.nn.sigmoid(pf1)
    pf2 = lax.conv_general_dilated(pf1, params["pf2_w"], (1, 1), "VALID",
                                   dimension_numbers=("NCHW", "OIHW", "NCHW"),
                                   precision=hi) + params["pf2_b"].reshape(1, 1, 1, 1)
    pf2 = jnp.maximum(pf2, 0.0)
    ev = jnp.concatenate([dm.reshape(-1), pf2.reshape(-1)])
    h = jnp.maximum(jnp.dot(params["ev1_w"], ev, precision=hi) + params["ev1_b"], 0.0)
    return jnp.maximum(jnp.dot(params["ev2_w"], h, precision=hi) + params["ev2_b"], 0.0)


if __name__ == "__main__":
    key = jax.random.PRNGKey(0)
    ks = jax.random.split(key, 16)

    def init(k, shape, scale=0.1):
        return scale * jax.random.normal(k, shape, jnp.float32)

    params = dict(
        fw_w=init(ks[0], (3, SIGHT, SIGHT)),   # FoodWeight(3, 11, 11) weight
        fw_b=init(ks[1], (3, SIGHT, SIGHT)),   # FoodWeight bias
        dm_w=init(ks[2], (1, 3, 3, 3)),        # DM_conv  = Conv2d(3, 1, 3, stride=2)
        dm_b=init(ks[3], (1,)),
        pf1_w=init(ks[4], (4, 2, 3, 3)),       # PF_conv1 = Conv2d(2, 4, 3)
        pf1_b=init(ks[5], (4,)),
        pf2_w=init(ks[6], (1, 4, 5, 5)),       # PF_conv2 = Conv2d(4, 1, 5)
        pf2_b=init(ks[7], (1,)),
        ev1_w=init(ks[8], (8, 50)),            # EV_linear1 = Linear(50, 8)
        ev1_b=init(ks[9], (8,)),
        ev2_w=init(ks[10], (5, 8)),            # EV_linear2 = Linear(8, 5)
        ev2_b=init(ks[11], (5,)),
    )

    # Cached parameter slab: built once, reused by every forward call.
    pslab = jax.block_until_ready(make_param_slab(params))

    # A small batch of states s = (food, vision).
    B = 4
    vision = jax.random.randint(ks[12], (B, 4, SIGHT, SIGHT), 0, 2).astype(jnp.float32)
    food = jnp.arange(1, B + 1, dtype=jnp.float32)

    qs = jax.block_until_ready(brainv1_forward_batched(food, vision, pslab))
    assert qs.shape == (B, 5), qs.shape

    # Numerical check vs the plain-JAX reference (tolerance tightened ~200x vs v2).
    for b in range(B):
        q_exp = brainv1_reference(food[b], vision[b], params)
        assert jnp.allclose(qs[b], q_exp, atol=5e-5, rtol=5e-4), (b, qs[b], q_exp)

    # Single-sample path (module-style forward) matches the batched path.
    q0 = jax.block_until_ready(brainv1_forward(food[0], vision[0], pslab))
    assert q0.shape == (5,), q0.shape
    assert jnp.allclose(q0, qs[0], atol=1e-6), (q0, qs[0])

    print("KERNEL_OK")
</pallas_src>

<mosaic_0001>
module attributes {stable_mosaic.version = 11 : i64} {
  func.func @brainv1_kernel(%arg0: i32, %arg1: memref<1x8x128xf32, #tpu.memory_space<vmem>>, %arg2: memref<52x8x128xf32, #tpu.memory_space<vmem>>, %arg3: memref<1x8x128xf32, #tpu.memory_space<vmem>>) attributes {dimension_semantics = [#tpu.dimension_semantics<parallel>], iteration_bounds = array<i64: 4>, scalar_prefetch = 0 : i64, scratch_operands = 0 : i64, tpu.core_type = #tpu.core_type<tc>, window_params = [{transform_indices = @transform_0, window_bounds = array<i64: 1, 8, 128>}, {pipeline_mode = #tpu.pipeline_mode<synchronous>, transform_indices = @transform_1, window_bounds = array<i64: 52, 8, 128>}, {transform_indices = @transform_2, window_bounds = array<i64: 1, 8, 128>}]} {
    %c0 = arith.constant 0 : index
    %c0_0 = arith.constant 0 : index
    %c0_1 = arith.constant 0 : index
    %0 = vector.load %arg1[%c0, %c0_0, %c0_1] : memref<1x8x128xf32, #tpu.memory_space<vmem>>, vector<1x8x128xf32>
    %1 = vector.shape_cast %0 : vector<1x8x128xf32> to vector<8x128xf32>
    %2 = vector.extract_strided_slice %1 {offsets = [4, 0], sizes = [1, 128], strides = [1, 1]} : vector<8x128xf32> to vector<1x128xf32>
    %c0_2 = arith.constant 0 : index
    %c0_3 = arith.constant 0 : index
    %c0_4 = arith.constant 0 : index
    %3 = vector.load %arg2[%c0_2, %c0_3, %c0_4] : memref<52x8x128xf32, #tpu.memory_space<vmem>>, vector<1x8x128xf32>
    %4 = vector.shape_cast %3 : vector<1x8x128xf32> to vector<8x128xf32>
    %5 = vector.broadcast %2 : vector<1x128xf32> to vector<8x128xf32>
    %6 = arith.mulf %5, %4 : vector<8x128xf32>
    %c1 = arith.constant 1 : index
    %c0_5 = arith.constant 0 : index
    %c0_6 = arith.constant 0 : index
    %7 = vector.load %arg2[%c1, %c0_5, %c0_6] : memref<52x8x128xf32, #tpu.memory_space<vmem>>, vector<1x8x128xf32>
    %8 = vector.shape_cast %7 : vector<1x8x128xf32> to vector<8x128xf32>
    %9 = arith.addf %6, %8 : vector<8x128xf32>
    %10 = arith.mulf %1, %9 : vector<8x128xf32>
    %cst = arith.constant 0.000000e+00 : f32
    %11 = vector.broadcast %cst : f32 to vector<8x128xf32>
    %12 = arith.maximumf %10, %11 : vector<8x128xf32>
    %c2 = arith.constant 2 : index
    %c0_7 = arith.constant 0 : index
    %c0_8 = arith.constant 0 : index
    %13 = vector.load %arg2[%c2, %c0_7, %c0_8] : memref<52x8x128xf32, #tpu.memory_space<vmem>>, vector<1x8x128xf32>
    %14 = vector.shape_cast %13 : vector<1x8x128xf32> to vector<8x128xf32>
    %15 = arith.mulf %12, %14 : vector<8x128xf32>
    %c127_i32 = arith.constant 127 : i32
    %16 = tpu.dynamic_rotate %12 by %c127_i32 dim 1 : vector<8x128xf32>, i32 -> vector<8x128xf32>
    %c3 = arith.constant 3 : index
    %c0_9 = arith.constant 0 : index
    %c0_10 = arith.constant 0 : index
    %17 = vector.load %arg2[%c3, %c0_9, %c0_10] : memref<52x8x128xf32, #tpu.memory_space<vmem>>, vector<1x8x128xf32>
    %18 = vector.shape_cast %17 : vector<1x8x128xf32> to vector<8x128xf32>
    %19 = arith.mulf %16, %18 : vector<8x128xf32>
    %20 = arith.addf %15, %19 : vector<8x128xf32>
    %c126_i32 = arith.constant 126 : i32
    %21 = tpu.dynamic_rotate %12 by %c126_i32 dim 1 : vector<8x128xf32>, i32 -> vector<8x128xf32>
    %c4 = arith.constant 4 : index
    %c0_11 = arith.constant 0 : index
    %c0_12 = arith.constant 0 : index
    %22 = vector.load %arg2[%c4, %c0_11, %c0_12] : memref<52x8x128xf32, #tpu.memory_space<vmem>>, vector<1x8x128xf32>
    %23 = vector.shape_cast %22 : vector<1x8x128xf32> to vector<8x128xf32>
    %24 = arith.mulf %21, %23 : vector<8x128xf32>
    %25 = arith.addf %20, %24 : vector<8x128xf32>
    %c117_i32 = arith.constant 117 : i32
    %26 = tpu.dynamic_rotate %12 by %c117_i32 dim 1 : vector<8x128xf32>, i32 -> vector<8x128xf32>
    %c5 = arith.constant 5 : index
    %c0_13 = arith.constant 0 : index
    %c0_14 = arith.constant 0 : index
    %27 = vector.load %arg2[%c5, %c0_13, %c0_14] : memref<52x8x128xf32, #tpu.memory_space<vmem>>, vector<1x8x128xf32>
    %28 = vector.shape_cast %27 : vector<1x8x128xf32> to vector<8x128xf32>
    %29 = arith.mulf %26, %28 : vector<8x128xf32>
    %c116_i32 = arith.constant 116 : i32
    %30 = tpu.dynamic_rotate %12 by %c116_i32 dim 1 : vector<8x128xf32>, i32 -> vector<8x128xf32>
    %c6 = arith.constant 6 : index
    %c0_15 = arith.constant 0 : index
    %c0_16 = arith.constant 0 : index
    %31 = vector.load %arg2[%c6, %c0_15, %c0_16] : memref<52x8x128xf32, #tpu.memory_space<vmem>>, vector<1x8x128xf32>
    %32 = vector.shape_cast %31 : vector<1x8x128xf32> to vector<8x128xf32>
    %33 = arith.mulf %30, %32 : vector<8x128xf32>
    %34 = arith.addf %29, %33 : vector<8x128xf32>
    %c115_i32 = arith.constant 115 : i32
    %35 = tpu.dynamic_rotate %12 by %c115_i32 dim 1 : vector<8x128xf32>, i32 -> vector<8x128xf32>
    %c7 = arith.constant 7 : index
    %c0_17 = arith.constant 0 : index
    %c0_18 = arith.constant 0 : index
    %36 = vector.load %arg2[%c7, %c0_17, %c0_18] : memref<52x8x128xf32, #tpu.memory_space<vmem>>, vector<1x8x128xf32>
    %37 = vector.shape_cast %36 : vector<1x8x128xf32> to vector<8x128xf32>
    %38 = arith.mulf %35, %37 : vector<8x128xf32>
    %39 = arith.addf %34, %38 : vector<8x128xf32>
    %c106_i32 = arith.constant 106 : i32
    %40 = tpu.dynamic_rotate %12 by %c106_i32 dim 1 : vector<8x128xf32>, i32 -> vector<8x128xf32>
    %c8 = arith.constant 8 : index
    %c0_19 = arith.constant 0 : index
    %c0_20 = arith.constant 0 : index
    %41 = vector.load %arg2[%c8, %c0_19, %c0_20] : memref<52x8x128xf32, #tpu.memory_space<vmem>>, vector<1x8x128xf32>
    %42 = vector.shape_cast %41 : vector<1x8x128xf32> to vector<8x128xf32>
    %43 = arith.mulf %40, %42 : vector<8x128xf32>
    %c105_i32 = arith.constant 105 : i32
    %44 = tpu.dynamic_rotate %12 by %c105_i32 dim 1 : vector<8x128xf32>, i32 -> vector<8x128xf32>
    %c9 = arith.constant 9 : index
    %c0_21 = arith.constant 0 : index
    %c0_22 = arith.constant 0 : index
    %45 = vector.load %arg2[%c9, %c0_21, %c0_22] : memref<52x8x128xf32, #tpu.memory_space<vmem>>, vector<1x8x128xf32>
    %46 = vector.shape_cast %45 : vector<1x8x128xf32> to vector<8x128xf32>
    %47 = arith.mulf %44, %46 : vector<8x128xf32>
    %48 = arith.addf %43, %47 : vector<8x128xf32>
    %c104_i32 = arith.constant 104 : i32
    %49 = tpu.dynamic_rotate %12 by %c104_i32 dim 1 : vector<8x128xf32>, i32 -> vector<8x128xf32>
    %c10 = arith.constant 10 : index
    %c0_23 = arith.constant 0 : index
    %c0_24 = arith.constant 0 : index
    %50 = vector.load %arg2[%c10, %c0_23, %c0_24] : memref<52x8x128xf32, #tpu.memory_space<vmem>>, vector<1x8x128xf32>
    %51 = vector.shape_cast %50 : vector<1x8x128xf32> to vector<8x128xf32>
    %52 = arith.mulf %49, %51 : vector<8x128xf32>
    %53 = arith.addf %48, %52 : vector<8x128xf32>
    %54 = arith.addf %25, %39 : vector<8x128xf32>
    %55 = arith.addf %54, %53 : vector<8x128xf32>
    %cst_25 = arith.constant dense<0.000000e+00> : vector<128xf32>
    %56 = vector.multi_reduction <add>, %55, %cst_25 [0] : vector<8x128xf32> to vector<128xf32>
    %57 = vector.shape_cast %56 : vector<128xf32> to vector<1x128xf32>
    %58 = vector.extract_strided_slice %1 {offsets = [3, 0], sizes = [1, 128], strides = [1, 1]} : vector<8x128xf32> to vector<1x128xf32>
    %59 = vector.shape_cast %58 : vector<1x128xf32> to vector<1x128xf32>
    %60 = vector.broadcast %59 : vector<1x128xf32> to vector<4x128xf32>
    %61 = vector.extract_strided_slice %1 {offsets = [2, 0], sizes = [1, 128], strides = [1, 1]} : vector<8x128xf32> to vector<1x128xf32>
    %62 = vector.shape_cast %61 : vector<1x128xf32> to vector<1x128xf32>
    %63 = vector.broadcast %62 : vector<1x128xf32> to vector<4x128xf32>
    %64 = tpu.concatenate %60, %63 in 0 : vector<4x128xf32>, vector<4x128xf32> -> vector<8x128xf32>
    %c11 = arith.constant 11 : index
    %c0_26 = arith.constant 0 : index
    %c0_27 = arith.constant 0 : index
    %65 = vector.load %arg2[%c11, %c0_26, %c0_27] : memref<52x8x128xf32, #tpu.memory_space<vmem>>, vector<1x8x128xf32>
    %66 = vector.shape_cast %65 : vector<1x8x128xf32> to vector<8x128xf32>
    %67 = arith.mulf %64, %66 : vector<8x128xf32>
    %c127_i32_28 = arith.constant 127 : i32
    %68 = tpu.dynamic_rotate %64 by %c127_i32_28 dim 1 : vector<8x128xf32>, i32 -> vector<8x128xf32>
    %c12 = arith.constant 12 : index
    %c0_29 = arith.constant 0 : index
    %c0_30 = arith.constant 0 : index
    %69 = vector.load %arg2[%c12, %c0_29, %c0_30] : memref<52x8x128xf32, #tpu.memory_space<vmem>>, vector<1x8x128xf32>
    %70 = vector.shape_cast %69 : vector<1x8x128xf32> to vector<8x128xf32>
    %71 = arith.mulf %68, %70 : vector<8x128xf32>
    %72 = arith.addf %67, %71 : vector<8x128xf32>
    %c126_i32_31 = arith.constant 126 : i32
    %73 = tpu.dynamic_rotate %64 by %c126_i32_31 dim 1 : vector<8x128xf32>, i32 -> vector<8x128xf32>
    %c13 = arith.constant 13 : index
    %c0_32 = arith.constant 0 : index
    %c0_33 = arith.constant 0 : index
    %74 = vector.load %arg2[%c13, %c0_32, %c0_33] : memref<52x8x128xf32, #tpu.memory_space<vmem>>, vector<1x8x128xf32>
    %75 = vector.shape_cast %74 : vector<1x8x128xf32> to vector<8x128xf32>
    %76 = arith.mulf %73, %75 : vector<8x128xf32>
    %77 = arith.addf %72, %76 : vector<8x128xf32>
    %c117_i32_34 = arith.constant 117 : i32
    %78 = tpu.dynamic_rotate %64 by %c117_i32_34 dim 1 : vector<8x128xf32>, i32 -> vector<8x128xf32>
    %c14 = arith.constant 14 : index
    %c0_35 = arith.constant 0 : index
    %c0_36 = arith.constant 0 : index
    %79 = vector.load %arg2[%c14, %c0_35, %c0_36] : memref<52x8x128xf32, #tpu.memory_space<vmem>>, vector<1x8x128xf32>
    %80 = vector.shape_cast %79 : vector<1x8x128xf32> to vector<8x128xf32>
    %81 = arith.mulf %78, %80 : vector<8x128xf32>
    %c116_i32_37 = arith.constant 116 : i32
    %82 = tpu.dynamic_rotate %64 by %c116_i32_37 dim 1 : vector<8x128xf32>, i32 -> vector<8x128xf32>
    %c15 = arith.constant 15 : index
    %c0_38 = arith.constant 0 : index
    %c0_39 = arith.constant 0 : index
    %83 = vector.load %arg2[%c15, %c0_38, %c0_39] : memref<52x8x128xf32, #tpu.memory_space<vmem>>, vector<1x8x128xf32>
    %84 = vector.shape_cast %83 : vector<1x8x128xf32> to vector<8x128xf32>
    %85 = arith.mulf %82, %84 : vector<8x128xf32>
    %86 = arith.addf %81, %85 : vector<8x128xf32>
    %c115_i32_40 = arith.constant 115 : i32
    %87 = tpu.dynamic_rotate %64 by %c115_i32_40 dim 1 : vector<8x128xf32>, i32 -> vector<8x128xf32>
    %c16 = arith.constant 16 : index
    %c0_41 = arith.constant 0 : index
    %c0_42 = arith.constant 0 : index
    %88 = vector.load %arg2[%c16, %c0_41, %c0_42] : memref<52x8x128xf32, #tpu.memory_space<vmem>>, vector<1x8x128xf32>
    %89 = vector.shape_cast %88 : vector<1x8x128xf32> to vector<8x128xf32>
    %90 = arith.mulf %87, %89 : vector<8x128xf32>
    %91 = arith.addf %86, %90 : vector<8x128xf32>
    %c106_i32_43 = arith.constant 106 : i32
    %92 = tpu.dynamic_rotate %64 by %c106_i32_43 dim 1 : vector<8x128xf32>, i32 -> vector<8x128xf32>
    %c17 = arith.constant 17 : index
    %c0_44 = arith.constant 0 : index
    %c0_45 = arith.constant 0 : index
    %93 = vector.load %arg2[%c17, %c0_44, %c0_45] : memref<52x8x128xf32, #tpu.memory_space<vmem>>, vector<1x8x128xf32>
    %94 = vector.shape_cast %93 : vector<1x8x128xf32> to vector<8x128xf32>
    %95 = arith.mulf %92, %94 : vector<8x128xf32>
    %c105_i32_46 = arith.constant 105 : i32
    %96 = tpu.dynamic_rotate %64 by %c105_i32_46 dim 1 : vector<8x128xf32>, i32 -> vector<8x128xf32>
    %c18 = arith.constant 18 : index
    %c0_47 = arith.constant 0 : index
    %c0_48 = arith.constant 0 : index
    %97 = vector.load %arg2[%c18, %c0_47, %c0_48] : memref<52x8x128xf32, #tpu.memory_space<vmem>>, vector<1x8x128xf32>
    %98 = vector.shape_cast %97 : vector<1x8x128xf32> to vector<8x128xf32>
    %99 = arith.mulf %96, %98 : vector<8x128xf32>
    %100 = arith.addf %95, %99 : vector<8x128xf32>
    %c104_i32_49 = arith.constant 104 : i32
    %101 = tpu.dynamic_rotate %64 by %c104_i32_49 dim 1 : vector<8x128xf32>, i32 -> vector<8x128xf32>
    %c19 = arith.constant 19 : index
    %c0_50 = arith.constant 0 : index
    %c0_51 = arith.constant 0 : index
    %102 = vector.load %arg2[%c19, %c0_50, %c0_51] : memref<52x8x128xf32, #tpu.memory_space<vmem>>, vector<1x8x128xf32>
    %103 = vector.shape_cast %102 : vector<1x8x128xf32> to vector<8x128xf32>
    %104 = arith.mulf %101, %103 : vector<8x128xf32>
    %105 = arith.addf %100, %104 : vector<8x128xf32>
    %106 = arith.addf %77, %91 : vector<8x128xf32>
    %107 = arith.addf %106, %105 : vector<8x128xf32>
    %108 = vector.extract_strided_slice %107 {offsets = [0, 0], sizes = [4, 128], strides = [1, 1]} : vector<8x128xf32> to vector<4x128xf32>
    %109 = vector.extract_strided_slice %107 {offsets = [4, 0], sizes = [4, 128], strides = [1, 1]} : vector<8x128xf32> to vector<4x128xf32>
    %110 = arith.addf %108, %109 : vector<4x128xf32>
    %c45 = arith.constant 45 : index
    %c0_52 = arith.constant 0 : index
    %c0_53 = arith.constant 0 : index
    %111 = vector.load %arg2[%c45, %c0_52, %c0_53] : memref<52x8x128xf32, #tpu.memory_space<vmem>>, vector<1x8x128xf32>
    %112 = vector.shape_cast %111 : vector<1x8x128xf32> to vector<8x128xf32>
    %113 = vector.extract_strided_slice %112 {offsets = [0, 0], sizes = [4, 128], strides = [1, 1]} : vector<8x128xf32> to vector<4x128xf32>
    %114 = arith.addf %110, %113 : vector<4x128xf32>
    %cst_54 = arith.constant 5.000000e-01 : f32
    %115 = vector.broadcast %cst_54 : f32 to vector<4x128xf32>
    %116 = arith.mulf %115, %114 : vector<4x128xf32>
    %117 = math.tanh %116 : vector<4x128xf32>
    %cst_55 = arith.constant 5.000000e-01 : f32
    %118 = vector.broadcast %cst_55 : f32 to vector<4x128xf32>
    %119 = arith.mulf %118, %117 : vector<4x128xf32>
    %cst_56 = arith.constant 5.000000e-01 : f32
    %120 = vector.broadcast %cst_56 : f32 to vector<4x128xf32>
    %121 = arith.addf %119, %120 : vector<4x128xf32>
    %c20 = arith.constant 20 : index
    %c0_57 = arith.constant 0 : index
    %c0_58 = arith.constant 0 : index
    %122 = vector.load %arg2[%c20, %c0_57, %c0_58] : memref<52x8x128xf32, #tpu.memory_space<vmem>>, vector<1x8x128xf32>
    %123 = vector.shape_cast %122 : vector<1x8x128xf32> to vector<8x128xf32>
    %124 = vector.extract_strided_slice %123 {offsets = [0, 0], sizes = [4, 128], strides = [1, 1]} : vector<8x128xf32> to vector<4x128xf32>
    %125 = arith.mulf %121, %124 : vector<4x128xf32>
    %c127_i32_59 = arith.constant 127 : i32
    %126 = tpu.dynamic_rotate %121 by %c127_i32_59 dim 1 : vector<4x128xf32>, i32 -> vector<4x128xf32>
    %c21 = arith.constant 21 : index
    %c0_60 = arith.constant 0 : index
    %c0_61 = arith.constant 0 : index
    %127 = vector.load %arg2[%c21, %c0_60, %c0_61] : memref<52x8x128xf32, #tpu.memory_space<vmem>>, vector<1x8x128xf32>
    %128 = vector.shape_cast %127 : vector<1x8x128xf32> to vector<8x128xf32>
    %129 = vector.extract_strided_slice %128 {offsets = [0, 0], sizes = [4, 128], strides = [1, 1]} : vector<8x128xf32> to vector<4x128xf32>
    %130 = arith.mulf %126, %129 : vector<4x128xf32>
    %131 = arith.addf %125, %130 : vector<4x128xf32>
    %c126_i32_62 = arith.constant 126 : i32
    %132 = tpu.dynamic_rotate %121 by %c126_i32_62 dim 1 : vector<4x128xf32>, i32 -> vector<4x128xf32>
    %c22 = arith.constant 22 : index
    %c0_63 = arith.constant 0 : index
    %c0_64 = arith.constant 0 : index
    %133 = vector.load %arg2[%c22, %c0_63, %c0_64] : memref<52x8x128xf32, #tpu.memory_space<vmem>>, vector<1x8x128xf32>
    %134 = vector.shape_cast %133 : vector<1x8x128xf32> to vector<8x128xf32>
    %135 = vector.extract_strided_slice %134 {offsets = [0, 0], sizes = [4, 128], strides = [1, 1]} : vector<8x128xf32> to vector<4x128xf32>
    %136 = arith.mulf %132, %135 : vector<4x128xf32>
    %137 = arith.addf %131, %136 : vector<4x128xf32>
    %c125_i32 = arith.constant 125 : i32
    %138 = tpu.dynamic_rotate %121 by %c125_i32 dim 1 : vector<4x128xf32>, i32 -> vector<4x128xf32>
    %c23 = arith.constant 23 : index
    %c0_65 = arith.constant 0 : index
    %c0_66 = arith.constant 0 : index
    %139 = vector.load %arg2[%c23, %c0_65, %c0_66] : memref<52x8x128xf32, #tpu.memory_space<vmem>>, vector<1x8x128xf32>
    %140 = vector.shape_cast %139 : vector<1x8x128xf32> to vector<8x128xf32>
    %141 = vector.extract_strided_slice %140 {offsets = [0, 0], sizes = [4, 128], strides = [1, 1]} : vector<8x128xf32> to vector<4x128xf32>
    %142 = arith.mulf %138, %141 : vector<4x128xf32>
    %143 = arith.addf %137, %142 : vector<4x128xf32>
    %c124_i32 = arith.constant 124 : i32
    %144 = tpu.dynamic_rotate %121 by %c124_i32 dim 1 : vector<4x128xf32>, i32 -> vector<4x128xf32>
    %c24 = arith.constant 24 : index
    %c0_67 = arith.constant 0 : index
    %c0_68 = arith.constant 0 : index
    %145 = vector.load %arg2[%c24, %c0_67, %c0_68] : memref<52x8x128xf32, #tpu.memory_space<vmem>>, vector<1x8x128xf32>
    %146 = vector.shape_cast %145 : vector<1x8x128xf32> to vector<8x128xf32>
    %147 = vector.extract_strided_slice %146 {offsets = [0, 0], sizes = [4, 128], strides = [1, 1]} : vector<8x128xf32> to vector<4x128xf32>
    %148 = arith.mulf %144, %147 : vector<4x128xf32>
    %149 = arith.addf %143, %148 : vector<4x128xf32>
    %c117_i32_69 = arith.constant 117 : i32
    %150 = tpu.dynamic_rotate %121 by %c117_i32_69 dim 1 : vector<4x128xf32>, i32 -> vector<4x128xf32>
    %c25 = arith.constant 25 : index
    %c0_70 = arith.constant 0 : index
    %c0_71 = arith.constant 0 : index
    %151 = vector.load %arg2[%c25, %c0_70, %c0_71] : memref<52x8x128xf32, #tpu.memory_space<vmem>>, vector<1x8x128xf32>
    %152 = vector.shape_cast %151 : vector<1x8x128xf32> to vector<8x128xf32>
    %153 = vector.extract_strided_slice %152 {offsets = [0, 0], sizes = [4, 128], strides = [1, 1]} : vector<8x128xf32> to vector<4x128xf32>
    %154 = arith.mulf %150, %153 : vector<4x128xf32>
    %c116_i32_72 = arith.constant 116 : i32
    %155 = tpu.dynamic_rotate %121 by %c116_i32_72 dim 1 : vector<4x128xf32>, i32 -> vector<4x128xf32>
    %c26 = arith.constant 26 : index
    %c0_73 = arith.constant 0 : index
    %c0_74 = arith.constant 0 : index
    %156 = vector.load %arg2[%c26, %c0_73, %c0_74] : memref<52x8x128xf32, #tpu.memory_space<vmem>>, vector<1x8x128xf32>
    %157 = vector.shape_cast %156 : vector<1x8x128xf32> to vector<8x128xf32>
    %158 = vector.extract_strided_slice %157 {offsets = [0, 0], sizes = [4, 128], strides = [1, 1]} : vector<8x128xf32> to vector<4x128xf32>
    %159 = arith.mulf %155, %158 : vector<4x128xf32>
    %160 = arith.addf %154, %159 : vector<4x128xf32>
    %c115_i32_75 = arith.constant 115 : i32
    %161 = tpu.dynamic_rotate %121 by %c115_i32_75 dim 1 : vector<4x128xf32>, i32 -> vector<4x128xf32>
    %c27 = arith.constant 27 : index
    %c0_76 = arith.constant 0 : index
    %c0_77 = arith.constant 0 : index
    %162 = vector.load %arg2[%c27, %c0_76, %c0_77] : memref<52x8x128xf32, #tpu.memory_space<vmem>>, vector<1x8x128xf32>
    %163 = vector.shape_cast %162 : vector<1x8x128xf32> to vector<8x128xf32>
    %164 = vector.extract_strided_slice %163 {offsets = [0, 0], sizes = [4, 128], strides = [1, 1]} : vector<8x128xf32> to vector<4x128xf32>
    %165 = arith.mulf %161, %164 : vector<4x128xf32>
    %166 = arith.addf %160, %165 : vector<4x128xf32>
    %c114_i32 = arith.constant 114 : i32
    %167 = tpu.dynamic_rotate %121 by %c114_i32 dim 1 : vector<4x128xf32>, i32 -> vector<4x128xf32>
    %c28 = arith.constant 28 : index
    %c0_78 = arith.constant 0 : index
    %c0_79 = arith.constant 0 : index
    %168 = vector.load %arg2[%c28, %c0_78, %c0_79] : memref<52x8x128xf32, #tpu.memory_space<vmem>>, vector<1x8x128xf32>
    %169 = vector.shape_cast %168 : vector<1x8x128xf32> to vector<8x128xf32>
    %170 = vector.extract_strided_slice %169 {offsets = [0, 0], sizes = [4, 128], strides = [1, 1]} : vector<8x128xf32> to vector<4x128xf32>
    %171 = arith.mulf %167, %170 : vector<4x128xf32>
    %172 = arith.addf %166, %171 : vector<4x128xf32>
    %c113_i32 = arith.constant 113 : i32
    %173 = tpu.dynamic_rotate %121 by %c113_i32 dim 1 : vector<4x128xf32>, i32 -> vector<4x128xf32>
    %c29 = arith.constant 29 : index
    %c0_80 = arith.constant 0 : index
    %c0_81 = arith.constant 0 : index
    %174 = vector.load %arg2[%c29, %c0_80, %c0_81] : memref<52x8x128xf32, #tpu.memory_space<vmem>>, vector<1x8x128xf32>
    %175 = vector.shape_cast %174 : vector<1x8x128xf32> to vector<8x128xf32>
    %176 = vector.extract_strided_slice %175 {offsets = [0, 0], sizes = [4, 128], strides = [1, 1]} : vector<8x128xf32> to vector<4x128xf32>
    %177 = arith.mulf %173, %176 : vector<4x128xf32>
    %178 = arith.addf %172, %177 : vector<4x128xf32>
    %c106_i32_82 = arith.constant 106 : i32
    %179 = tpu.dynamic_rotate %121 by %c106_i32_82 dim 1 : vector<4x128xf32>, i32 -> vector<4x128xf32>
    %c30 = arith.constant 30 : index
    %c0_83 = arith.constant 0 : index
    %c0_84 = arith.constant 0 : index
    %180 = vector.load %arg2[%c30, %c0_83, %c0_84] : memref<52x8x128xf32, #tpu.memory_space<vmem>>, vector<1x8x128xf32>
    %181 = vector.shape_cast %180 : vector<1x8x128xf32> to vector<8x128xf32>
    %182 = vector.extract_strided_slice %181 {offsets = [0, 0], sizes = [4, 128], strides = [1, 1]} : vector<8x128xf32> to vector<4x128xf32>
    %183 = arith.mulf %179, %182 : vector<4x128xf32>
    %c105_i32_85 = arith.constant 105 : i32
    %184 = tpu.dynamic_rotate %121 by %c105_i32_85 dim 1 : vector<4x128xf32>, i32 -> vector<4x128xf32>
    %c31 = arith.constant 31 : index
    %c0_86 = arith.constant 0 : index
    %c0_87 = arith.constant 0 : index
    %185 = vector.load %arg2[%c31, %c0_86, %c0_87] : memref<52x8x128xf32, #tpu.memory_space<vmem>>, vector<1x8x128xf32>
    %186 = vector.shape_cast %185 : vector<1x8x128xf32> to vector<8x128xf32>
    %187 = vector.extract_strided_slice %186 {offsets = [0, 0], sizes = [4, 128], strides = [1, 1]} : vector<8x128xf32> to vector<4x128xf32>
    %188 = arith.mulf %184, %187 : vector<4x128xf32>
    %189 = arith.addf %183, %188 : vector<4x128xf32>
    %c104_i32_88 = arith.constant 104 : i32
    %190 = tpu.dynamic_rotate %121 by %c104_i32_88 dim 1 : vector<4x128xf32>, i32 -> vector<4x128xf32>
    %c32 = arith.constant 32 : index
    %c0_89 = arith.constant 0 : index
    %c0_90 = arith.constant 0 : index
    %191 = vector.load %arg2[%c32, %c0_89, %c0_90] : memref<52x8x128xf32, #tpu.memory_space<vmem>>, vector<1x8x128xf32>
    %192 = vector.shape_cast %191 : vector<1x8x128xf32> to vector<8x128xf32>
    %193 = vector.extract_strided_slice %192 {offsets = [0, 0], sizes = [4, 128], strides = [1, 1]} : vector<8x128xf32> to vector<4x128xf32>
    %194 = arith.mulf %190, %193 : vector<4x128xf32>
    %195 = arith.addf %189, %194 : vector<4x128xf32>
    %c103_i32 = arith.constant 103 : i32
    %196 = tpu.dynamic_rotate %121 by %c103_i32 dim 1 : vector<4x128xf32>, i32 -> vector<4x128xf32>
    %c33 = arith.constant 33 : index
    %c0_91 = arith.constant 0 : index
    %c0_92 = arith.constant 0 : index
    %197 = vector.load %arg2[%c33, %c0_91, %c0_92] : memref<52x8x128xf32, #tpu.memory_space<vmem>>, vector<1x8x128xf32>
    %198 = vector.shape_cast %197 : vector<1x8x128xf32> to vector<8x128xf32>
    %199 = vector.extract_strided_slice %198 {offsets = [0, 0], sizes = [4, 128], strides = [1, 1]} : vector<8x128xf32> to vector<4x128xf32>
    %200 = arith.mulf %196, %199 : vector<4x128xf32>
    %201 = arith.addf %195, %200 : vector<4x128xf32>
    %c102_i32 = arith.constant 102 : i32
    %202 = tpu.dynamic_rotate %121 by %c102_i32 dim 1 : vector<4x128xf32>, i32 -> vector<4x128xf32>
    %c34 = arith.constant 34 : index
    %c0_93 = arith.constant 0 : index
    %c0_94 = arith.constant 0 : index
    %203 = vector.load %arg2[%c34, %c0_93, %c0_94] : memref<52x8x128xf32, #tpu.memory_space<vmem>>, vector<1x8x128xf32>
    %204 = vector.shape_cast %203 : vector<1x8x128xf32> to vector<8x128xf32>
    %205 = vector.extract_strided_slice %204 {offsets = [0, 0], sizes = [4, 128], strides = [1, 1]} : vector<8x128xf32> to vector<4x128xf32>
    %206 = arith.mulf %202, %205 : vector<4x128xf32>
    %207 = arith.addf %201, %206 : vector<4x128xf32>
    %c95_i32 = arith.constant 95 : i32
    %208 = tpu.dynamic_rotate %121 by %c95_i32 dim 1 : vector<4x128xf32>, i32 -> vector<4x128xf32>
    %c35 = arith.constant 35 : index
    %c0_95 = arith.constant 0 : index
    %c0_96 = arith.constant 0 : index
    %209 = vector.load %arg2[%c35, %c0_95, %c0_96] : memref<52x8x128xf32, #tpu.memory_space<vmem>>, vector<1x8x128xf32>
    %210 = vector.shape_cast %209 : vector<1x8x128xf32> to vector<8x128xf32>
    %211 = vector.extract_strided_slice %210 {offsets = [0, 0], sizes = [4, 128], strides = [1, 1]} : vector<8x128xf32> to vector<4x128xf32>
    %212 = arith.mulf %208, %211 : vector<4x128xf32>
    %c94_i32 = arith.constant 94 : i32
    %213 = tpu.dynamic_rotate %121 by %c94_i32 dim 1 : vector<4x128xf32>, i32 -> vector<4x128xf32>
    %c36 = arith.constant 36 : index
    %c0_97 = arith.constant 0 : index
    %c0_98 = arith.constant 0 : index
    %214 = vector.load %arg2[%c36, %c0_97, %c0_98] : memref<52x8x128xf32, #tpu.memory_space<vmem>>, vector<1x8x128xf32>
    %215 = vector.shape_cast %214 : vector<1x8x128xf32> to vector<8x128xf32>
    %216 = vector.extract_strided_slice %215 {offsets = [0, 0], sizes = [4, 128], strides = [1, 1]} : vector<8x128xf32> to vector<4x128xf32>
    %217 = arith.mulf %213, %216 : vector<4x128xf32>
    %218 = arith.addf %212, %217 : vector<4x128xf32>
    %c93_i32 = arith.constant 93 : i32
    %219 = tpu.dynamic_rotate %121 by %c93_i32 dim 1 : vector<4x128xf32>, i32 -> vector<4x128xf32>
    %c37 = arith.constant 37 : index
    %c0_99 = arith.constant 0 : index
    %c0_100 = arith.constant 0 : index
    %220 = vector.load %arg2[%c37, %c0_99, %c0_100] : memref<52x8x128xf32, #tpu.memory_space<vmem>>, vector<1x8x128xf32>
    %221 = vector.shape_cast %220 : vector<1x8x128xf32> to vector<8x128xf32>
    %222 = vector.extract_strided_slice %221 {offsets = [0, 0], sizes = [4, 128], strides = [1, 1]} : vector<8x128xf32> to vector<4x128xf32>
    %223 = arith.mulf %219, %222 : vector<4x128xf32>
    %224 = arith.addf %218, %223 : vector<4x128xf32>
    %c92_i32 = arith.constant 92 : i32
    %225 = tpu.dynamic_rotate %121 by %c92_i32 dim 1 : vector<4x128xf32>, i32 -> vector<4x128xf32>
    %c38 = arith.constant 38 : index
    %c0_101 = arith.constant 0 : index
    %c0_102 = arith.constant 0 : index
    %226 = vector.load %arg2[%c38, %c0_101, %c0_102] : memref<52x8x128xf32, #tpu.memory_space<vmem>>, vector<1x8x128xf32>
    %227 = vector.shape_cast %226 : vector<1x8x128xf32> to vector<8x128xf32>
    %228 = vector.extract_strided_slice %227 {offsets = [0, 0], sizes = [4, 128], strides = [1, 1]} : vector<8x128xf32> to vector<4x128xf32>
    %229 = arith.mulf %225, %228 : vector<4x128xf32>
    %230 = arith.addf %224, %229 : vector<4x128xf32>
    %c91_i32 = arith.constant 91 : i32
    %231 = tpu.dynamic_rotate %121 by %c91_i32 dim 1 : vector<4x128xf32>, i32 -> vector<4x128xf32>
    %c39 = arith.constant 39 : index
    %c0_103 = arith.constant 0 : index
    %c0_104 = arith.constant 0 : index
    %232 = vector.load %arg2[%c39, %c0_103, %c0_104] : memref<52x8x128xf32, #tpu.memory_space<vmem>>, vector<1x8x128xf32>
    %233 = vector.shape_cast %232 : vector<1x8x128xf32> to vector<8x128xf32>
    %234 = vector.extract_strided_slice %233 {offsets = [0, 0], sizes = [4, 128], strides = [1, 1]} : vector<8x128xf32> to vector<4x128xf32>
    %235 = arith.mulf %231, %234 : vector<4x128xf32>
    %236 = arith.addf %230, %235 : vector<4x128xf32>
    %c84_i32 = arith.constant 84 : i32
    %237 = tpu.dynamic_rotate %121 by %c84_i32 dim 1 : vector<4x128xf32>, i32 -> vector<4x128xf32>
    %c40 = arith.constant 40 : index
    %c0_105 = arith.constant 0 : index
    %c0_106 = arith.constant 0 : index
    %238 = vector.load %arg2[%c40, %c0_105, %c0_106] : memref<52x8x128xf32, #tpu.memory_space<vmem>>, vector<1x8x128xf32>
    %239 = vector.shape_cast %238 : vector<1x8x128xf32> to vector<8x128xf32>
    %240 = vector.extract_strided_slice %239 {offsets = [0, 0], sizes = [4, 128], strides = [1, 1]} : vector<8x128xf32> to vector<4x128xf32>
    %241 = arith.mulf %237, %240 : vector<4x128xf32>
    %c83_i32 = arith.constant 83 : i32
    %242 = tpu.dynamic_rotate %121 by %c83_i32 dim 1 : vector<4x128xf32>, i32 -> vector<4x128xf32>
    %c41 = arith.constant 41 : index
    %c0_107 = arith.constant 0 : index
    %c0_108 = arith.constant 0 : index
    %243 = vector.load %arg2[%c41, %c0_107, %c0_108] : memref<52x8x128xf32, #tpu.memory_space<vmem>>, vector<1x8x128xf32>
    %244 = vector.shape_cast %243 : vector<1x8x128xf32> to vector<8x128xf32>
    %245 = vector.extract_strided_slice %244 {offsets = [0, 0], sizes = [4, 128], strides = [1, 1]} : vector<8x128xf32> to vector<4x128xf32>
    %246 = arith.mulf %242, %245 : vector<4x128xf32>
    %247 = arith.addf %241, %246 : vector<4x128xf32>
    %c82_i32 = arith.constant 82 : i32
    %248 = tpu.dynamic_rotate %121 by %c82_i32 dim 1 : vector<4x128xf32>, i32 -> vector<4x128xf32>
    %c42 = arith.constant 42 : index
    %c0_109 = arith.constant 0 : index
    %c0_110 = arith.constant 0 : index
    %249 = vector.load %arg2[%c42, %c0_109, %c0_110] : memref<52x8x128xf32, #tpu.memory_space<vmem>>, vector<1x8x128xf32>
    %250 = vector.shape_cast %249 : vector<1x8x128xf32> to vector<8x128xf32>
    %251 = vector.extract_strided_slice %250 {offsets = [0, 0], sizes = [4, 128], strides = [1, 1]} : vector<8x128xf32> to vector<4x128xf32>
    %252 = arith.mulf %248, %251 : vector<4x128xf32>
    %253 = arith.addf %247, %252 : vector<4x128xf32>
    %c81_i32 = arith.constant 81 : i32
    %254 = tpu.dynamic_rotate %121 by %c81_i32 dim 1 : vector<4x128xf32>, i32 -> vector<4x128xf32>
    %c43 = arith.constant 43 : index
    %c0_111 = arith.constant 0 : index
    %c0_112 = arith.constant 0 : index
    %255 = vector.load %arg2[%c43, %c0_111, %c0_112] : memref<52x8x128xf32, #tpu.memory_space<vmem>>, vector<1x8x128xf32>
    %256 = vector.shape_cast %255 : vector<1x8x128xf32> to vector<8x128xf32>
    %257 = vector.extract_strided_slice %256 {offsets = [0, 0], sizes = [4, 128], strides = [1, 1]} : vector<8x128xf32> to vector<4x128xf32>
    %258 = arith.mulf %254, %257 : vector<4x128xf32>
    %259 = arith.addf %253, %258 : vector<4x128xf32>
    %c80_i32 = arith.constant 80 : i32
    %260 = tpu.dynamic_rotate %121 by %c80_i32 dim 1 : vector<4x128xf32>, i32 -> vector<4x128xf32>
    %c44 = arith.constant 44 : index
    %c0_113 = arith.constant 0 : index
    %c0_114 = arith.constant 0 : index
    %261 = vector.load %arg2[%c44, %c0_113, %c0_114] : memref<52x8x128xf32, #tpu.memory_space<vmem>>, vector<1x8x128xf32>
    %262 = vector.shape_cast %261 : vector<1x8x128xf32> to vector<8x128xf32>
    %263 = vector.extract_strided_slice %262 {offsets = [0, 0], sizes = [4, 128], strides = [1, 1]} : vector<8x128xf32> to vector<4x128xf32>
    %264 = arith.mulf %260, %263 : vector<4x128xf32>
    %265 = arith.addf %259, %264 : vector<4x128xf32>
    %266 = arith.addf %149, %178 : vector<4x128xf32>
    %267 = arith.addf %207, %236 : vector<4x128xf32>
    %268 = arith.addf %266, %267 : vector<4x128xf32>
    %269 = arith.addf %268, %265 : vector<4x128xf32>
    %cst_115 = arith.constant dense<0.000000e+00> : vector<128xf32>
    %270 = vector.multi_reduction <add>, %269, %cst_115 [0] : vector<4x128xf32> to vector<128xf32>
    %271 = vector.shape_cast %270 : vector<128xf32> to vector<1x128xf32>
    %c46 = arith.constant 46 : index
    %c0_116 = arith.constant 0 : index
    %c0_117 = arith.constant 0 : index
    %272 = vector.load %arg2[%c46, %c0_116, %c0_117] : memref<52x8x128xf32, #tpu.memory_space<vmem>>, vector<1x8x128xf32>
    %273 = vector.shape_cast %272 : vector<1x8x128xf32> to vector<8x128xf32>
    %274 = vector.extract_strided_slice %273 {offsets = [0, 0], sizes = [1, 128], strides = [1, 1]} : vector<8x128xf32> to vector<1x128xf32>
    %275 = arith.addf %271, %274 : vector<1x128xf32>
    %cst_118 = arith.constant 0.000000e+00 : f32
    %276 = vector.broadcast %cst_118 : f32 to vector<1x128xf32>
    %277 = arith.maximumf %275, %276 : vector<1x128xf32>
    %c47 = arith.constant 47 : index
    %c0_119 = arith.constant 0 : index
    %c0_120 = arith.constant 0 : index
    %278 = vector.load %arg2[%c47, %c0_119, %c0_120] : memref<52x8x128xf32, #tpu.memory_space<vmem>>, vector<1x8x128xf32>
    %279 = vector.shape_cast %278 : vector<1x8x128xf32> to vector<8x128xf32>
    %280 = vector.broadcast %57 : vector<1x128xf32> to vector<8x128xf32>
    %281 = arith.mulf %280, %279 : vector<8x128xf32>
    %c48 = arith.constant 48 : index
    %c0_121 = arith.constant 0 : index
    %c0_122 = arith.constant 0 : index
    %282 = vector.load %arg2[%c48, %c0_121, %c0_122] : memref<52x8x128xf32, #tpu.memory_space<vmem>>, vector<1x8x128xf32>
    %283 = vector.shape_cast %282 : vector<1x8x128xf32> to vector<8x128xf32>
    %284 = vector.broadcast %277 : vector<1x128xf32> to vector<8x128xf32>
    %285 = arith.mulf %284, %283 : vector<8x128xf32>
    %286 = arith.addf %281, %285 : vector<8x128xf32>
    %c50 = arith.constant 50 : index
    %c0_123 = arith.constant 0 : index
    %c0_124 = arith.constant 0 : index
    %287 = vector.load %arg2[%c50, %c0_123, %c0_124] : memref<52x8x128xf32, #tpu.memory_space<vmem>>, vector<1x8x128xf32>
    %288 = vector.shape_cast %287 : vector<1x8x128xf32> to vector<8x128xf32>
    %289 = arith.addf %286, %288 : vector<8x128xf32>
    %cst_125 = arith.constant dense<0.000000e+00> : vector<8xf32>
    %290 = vector.multi_reduction <add>, %289, %cst_125 [1] : vector<8x128xf32> to vector<8xf32>
    %291 = vector.shape_cast %290 : vector<8xf32> to vector<8x1xf32>
    %cst_126 = arith.constant 0.000000e+00 : f32
    %292 = vector.broadcast %cst_126 : f32 to vector<8x1xf32>
    %293 = arith.maximumf %291, %292 : vector<8x1xf32>
    %c49 = arith.constant 49 : index
    %c0_127 = arith.constant 0 : index
    %c0_128 = arith.constant 0 : index
    %294 = vector.load %arg2[%c49, %c0_127, %c0_128] : memref<52x8x128xf32, #tpu.memory_space<vmem>>, vector<1x8x128xf32>
    %295 = vector.shape_cast %294 : vector<1x8x128xf32> to vector<8x128xf32>
    %296 = vector.broadcast %293 : vector<8x1xf32> to vector<8x128xf32>
    %297 = arith.mulf %296, %295 : vector<8x128xf32>
    %c51 = arith.constant 51 : index
    %c0_129 = arith.constant 0 : index
    %c0_130 = arith.constant 0 : index
    %298 = vector.load %arg2[%c51, %c0_129, %c0_130] : memref<52x8x128xf32, #tpu.memory_space<vmem>>, vector<1x8x128xf32>
    %299 = vector.shape_cast %298 : vector<1x8x128xf32> to vector<8x128xf32>
    %300 = arith.addf %297, %299 : vector<8x128xf32>
    %cst_131 = arith.constant dense<0.000000e+00> : vector<128xf32>
    %301 = vector.multi_reduction <add>, %300, %cst_131 [0] : vector<8x128xf32> to vector<128xf32>
    %302 = vector.shape_cast %301 : vector<128xf32> to vector<1x128xf32>
    %cst_132 = arith.constant 0.000000e+00 : f32
    %303 = vector.broadcast %cst_132 : f32 to vector<1x128xf32>
    %304 = arith.maximumf %302, %303 : vector<1x128xf32>
    %305 = vector.shape_cast %304 : vector<1x128xf32> to vector<1x1x128xf32>
    %306 = vector.broadcast %305 : vector<1x1x128xf32> to vector<1x8x128xf32>
    %c0_133 = arith.constant 0 : index
    %c0_134 = arith.constant 0 : index
    %c0_135 = arith.constant 0 : index
    %307 = vector.load %arg3[%c0_133, %c0_134, %c0_135] : memref<1x8x128xf32, #tpu.memory_space<vmem>>, vector<1x8x128xf32>
    tpu.vector_store %arg3[%c0_133, %c0_134, %c0_135], %306 {strides = array<i32>} : memref<1x8x128xf32, #tpu.memory_space<vmem>>, vector<1x8x128xf32>,
    return
  }
  func.func @transform_0(%arg0: i32) -> (i32, i32, i32) {
    %c0_i32 = arith.constant 0 : i32
    %c0_i32_0 = arith.constant 0 : i32
    %c0_i32_1 = arith.constant 0 : i32
    return %arg0, %c0_i32, %c0_i32_0 : i32, i32, i32
  }
  func.func @transform_1(%arg0: i32) -> (i32, i32, i32) {
    %c0_i32 = arith.constant 0 : i32
    %c0_i32_0 = arith.constant 0 : i32
    %c0_i32_1 = arith.constant 0 : i32
    %c0_i32_2 = arith.constant 0 : i32
    return %c0_i32, %c0_i32_0, %c0_i32_1 : i32, i32, i32
  }
  func.func @transform_2(%arg0: i32) -> (i32, i32, i32) {
    %c0_i32 = arith.constant 0 : i32
    %c0_i32_0 = arith.constant 0 : i32
    %c0_i32_1 = arith.constant 0 : i32
    return %arg0, %c0_i32, %c0_i32_0 : i32, i32, i32
  }
}

</mosaic_0001>

<bundles_post_ra>
// kernel: brainv1_forward_batched.1
= control target key start
LH: loop header
LB: loop body
LE: loop exit
PB: predicated region body
PF: predicated region fallthrough
CT: control target
= control target key end

     0   :  { %s663_s9 = smov 0   ;;  %s925_s0 = inlined_call_operand.vmem [shape: f32[4,8,128], index: 0, kind: input, shape index: {}]   ;;  %s926_s1 = inlined_call_operand.vmem [shape: f32[52,8,128], index: 1, kind: input, shape index: {}]   ;;  %s927_s2 = inlined_call_operand.vmem [shape: f32[4,8,128], index: 2, kind: output, shape index: {}]  }
   0x1 LB: > { %s522_s10 = sadd.s32 4294967295, %s622_s9   ;;  %p526_p0 = scmp.ge.s32.totalorder %s622_s9, 1  ;;  %s622_s9 = sphi %s663_s9, %s12_s9  }
   0x2   : > { %p111_p1 = scmp.lt.s32.totalorder %s622_s9, 5 }
   0x4   : > { %p112_p2 = pnand %p526_p0, %p111_p1 }
   0x5   : > { %p131_p3 = scmp.lt.s32.totalorder (!%p112_p2), %s522_s10, 3  ;;  %v141_v0 = vlaneseq (!%p112_p2)  ;;  %vm216_vm0 = vcmask (!%p112_p2), 1043456   ;;  %v140_v6 = vld [vmem:[%s926_s1] sm:$0xff] (!%p112_p2)  ;;  %s624_s17 = smov (!%p112_p2), 116   ;;  %v529_v12 = vld [vmem:[%s926_s1 + $0x8] sm:$0xff] (!%p112_p2)  ;;  %v542_v19 = vld [vmem:[%s926_s1 + $0x70] sm:$0xff] (!%p112_p2) }
   0x6   : > { %115 = sbr.rel (%p112_p2) target bundleno = 534 (0x216), region = 28  ;;  %s625_s18 = smov (!%p112_p2), 127   ;;  %v539_v21 = vld [vmem:[%s926_s1 + $0x58] sm:$0xff] (!%p112_p2)  ;;  %v540_v22 = vld [vmem:[%s926_s1 + $0x60] sm:$0xff] (!%p112_p2)  ;;  %v541_v28 = vld [vmem:[%s926_s1 + $0x68] sm:$0xff] (!%p112_p2) }
   0x7   : > { %v673_v1 = vshrl.u32 (!%p112_p2), %v141_v0, 7  ;;  %s626_s21 = smov (!%p112_p2), 126   ;;  %s627_s22 = smov (!%p112_p2), 117   ;;  %v543_v23 = vld [vmem:[%s926_s1 + $0x78] sm:$0xff] (!%p112_p2)  ;;  %v544_v24 = vld [vmem:[%s926_s1 + $0x80] sm:$0xff] (!%p112_p2)  ;;  %v545_v33 = vld [vmem:[%s926_s1 + $0x88] sm:$0xff] (!%p112_p2) }
   0x8   : > { %s628_s23 = smov (!%p112_p2), 115   ;;  %s629_s24 = smov (!%p112_p2), 106   ;;  %v546_v34 = vld [vmem:[%s926_s1 + $0x90] sm:$0xff] (!%p112_p2)  ;;  %v547_v35 = vld [vmem:[%s926_s1 + $0x98] sm:$0xff] (!%p112_p2)  ;;  %v548_v51 = vld [vmem:[%s926_s1 + $0x168] sm:$0xff] (!%p112_p2) }
   0x9   : > { %v143_v2 = vsub.s32 (!%p112_p2), 4, %v673_v1  ;;  %v210_v3 = vsub.s32 (!%p112_p2), 3, %v673_v1  ;;  %v214_v4 = vsub.s32 (!%p112_p2), 2, %v673_v1  ;;  %s630_s25 = smov (!%p112_p2), 105   ;;  %s631_s26 = smov (!%p112_p2), 104  }
   0xa   : > { %s632_s30 = smov (!%p112_p2), 95   ;;  %s633_s3 = smov (!%p112_p2), 94  }
   0xb   : > { %s637_s4 = smov (!%p112_p2), 114   ;;  %s639_s5 = smov (!%p112_p2), 92  }
   0xc   : > { %s640_s6 = smov (!%p112_p2), 124   ;;  %s641_s7 = smov (!%p112_p2), 83  }
   0xd   : > { %s929_s10 = smov (!%p131_p3, %s522_s10), 3  ;;  %s642_s8 = smov 102  }
   0xe   : > { %s527_s11 = sshll.u32 %s929_s10, 3  ;;  %s643_s12 = smov 113  }
   0xf   : > { %s134_s14 = scalar_lea.vmem %s925_s0, %s527_s11  ;;  %s644_s13 = smov 82  }
  0x10   : > { %v139_v5 = vld [vmem:[%s134_s14] sm:$0xff]  ;;  %s645_s14 = smov 91   ;;  %s646_s15 = smov 80  }
  0x11   : > { %v211_v7 = vrot.slane %v139_v5, %v210_v3  ;;  %v215_v8 = vrot.slane %v139_v5, %v214_v4  ;;  %v144_v9 = vrot.slane %v139_v5, %v143_v2  ;;  %s647_s16 = smov 81   ;;  %s138_s28 = scalar_lea.vmem %s927_s2, %s527_s11 }
  0x13   : > { %v217_v10 = vsel %vm216_vm0, %v211_v7, %v215_v8  ;;  %v145_v11 = vmul.f32 %v144_v9, %v140_v6 }
  0x14   : > { %238 = vrot.lane.b32.xlu1 %v217_v10, %s624_s17  ;;  %221 = vrot.lane.b32.xlu0 %v217_v10, %s625_s18  ;;  %v220_v26 = vmul.f32 %v539_v21, %v217_v10  ;;  %v559_v21 = vld [vmem:[%s926_s1 + $0xf0] sm:$0xff] }
  0x15   : > { %v148_v13 = vadd.f32 %v529_v12, %v145_v11 }
  0x17   : > { %v149_v14 = vmul.f32 %v148_v13, %v139_v5  ;;  %v555_v13 = vld [vmem:[%s926_s1 + $0xd0] sm:$0xff] }
  0x18   : > { %227 = vrot.lane.b32.xlu1 %v217_v10, %s626_s21  ;;  %233 = vrot.lane.b32.xlu0 %v217_v10, %s627_s22 }
  0x19   : > { %v697_v15 = vmax.f32 %v149_v14, 0.0 }
  0x1c   : > { %244 = vrot.lane.b32.xlu0 %v217_v10, %s628_s23  ;;  %250 = vrot.lane.b32.xlu1 %v217_v10, %s629_s24 }
  0x20   : > { %255 = vrot.lane.b32.xlu0 %v217_v10, %s630_s25  ;;  %261 = vrot.lane.b32.xlu1 %v217_v10, %s631_s26 }
  0x24   : > { %166 = vrot.lane.b32.xlu1 %v697_v15, %s627_s22  ;;  %154 = vrot.lane.b32.xlu0 %v697_v15, %s625_s18 }
  0x28   : > { %160 = vrot.lane.b32.xlu1 %v697_v15, %s626_s21  ;;  %171 = vrot.lane.b32.xlu0 %v697_v15, %s624_s17 }
  0x86   : > { %v239_v16 = vpop.permute.xlu1 %238  ;;  %v222_v17 = vpop.permute.xlu0 %221 }
  0x87   : > { %v225_v27 = vmul.f32 %v540_v22, %v222_v17  ;;  %v242_v31 = vmul.f32 %v543_v23, %v239_v16  ;;  %v560_v17 = vld [vmem:[%s926_s1 + $0xf8] sm:$0xff]  ;;  %v561_v23 = vld [vmem:[%s926_s1 + $0x100] sm:$0xff] }
  0x89   : > { %v226_v38 = vadd.f32 %v225_v27, %v220_v26  ;;  %v564_v26 = vld [vmem:[%s926_s1 + $0x118] sm:$0xff] }
  0x8a   : > { %v228_v18 = vpop.permute.xlu1 %227  ;;  %v234_v20 = vpop.permute.xlu0 %233 }
  0x8b   : > { %v237_v25 = vmul.f32 %v542_v19, %v234_v20  ;;  %v231_v36 = vmul.f32 %v541_v28, %v228_v18  ;;  %v554_v18 = vld [vmem:[%s926_s1 + $0xc8] sm:$0xff]  ;;  %v565_v20 = vld [vmem:[%s926_s1 + $0x120] sm:$0xff] }
  0x8c   : > { %v550_v19 = vld [vmem:[%s926_s1 + $0xa8] sm:$0xff] }
  0x8d   : > { %v243_v37 = vadd.f32 %v242_v31, %v237_v25  ;;  %v232_v45 = vadd.f32 %v231_v36, %v226_v38  ;;  %v549_v25 = vld [vmem:[%s926_s1 + $0xa0] sm:$0xff]  ;;  %v566_v28 = vld [vmem:[%s926_s1 + $0x128] sm:$0xff] }
  0x8e   : > { %v245_v29 = vpop.permute.xlu0 %244  ;;  %v251_v30 = vpop.permute.xlu1 %250 }
  0x8f   : > { %v248_v32 = vmul.f32 %v544_v24, %v245_v29  ;;  %v254_v42 = vmul.f32 %v545_v33, %v251_v30  ;;  %v556_v24 = vld [vmem:[%s926_s1 + $0xd8] sm:$0xff] }
  0x91   : > { %v249_v41 = vadd.f32 %v248_v32, %v243_v37  ;;  %v551_v32 = vld [vmem:[%s926_s1 + $0xb0] sm:$0xff] }
  0x92   : > { %v256_v39 = vpop.permute.xlu0 %255  ;;  %v262_v40 = vpop.permute.xlu1 %261 }
  0x93   : > { %v259_v43 = vmul.f32 %v546_v34, %v256_v39  ;;  %v265_v44 = vmul.f32 %v547_v35, %v262_v40  ;;  %v267_v47 = vadd.f32 %v249_v41, %v232_v45  ;;  %v562_v34 = vld [vmem:[%s926_s1 + $0x108] sm:$0xff]  ;;  %v557_v35 = vld [vmem:[%s926_s1 + $0xe0] sm:$0xff]  ;;  %v567_v40 = vld [vmem:[%s926_s1 + $0x130] sm:$0xff] }
  0x95   : > { %v260_v46 = vadd.f32 %v259_v43, %v254_v42 }
  0x96   : > { %v781_v58 = vpop.permute.xlu1 %166  ;;  %v783_v59 = vpop.permute.xlu0 %154 }
  0x97   : > { %v266_v48 = vadd.f32 %v265_v44, %v260_v46  ;;  %v552_v44 = vld [vmem:[%s926_s1 + $0xb8] sm:$0xff] }
  0x99   : > { %v268_v49 = vadd.f32 %v267_v47, %v266_v48 }
  0x9a   : > { %v785_v60 = vpop.permute.xlu1 %160  ;;  %v787_v61 = vpop.permute.xlu0 %171 }
  0x9b   : > { %v270_v50 = vrot.slane %v268_v49, 4 }
  0x9d   : > { %v272_v52 = vadd.f32 %v270_v50, %v268_v49  ;;  %v570_v50 = vld [vmem:[%s926_s1 + $0x148] sm:$0xff] }
  0x9f   : > { %v275_v53 = vadd.f32 %v548_v51, %v272_v52  ;;  %v563_v51 = vld [vmem:[%s926_s1 + $0x110] sm:$0xff] }
  0xa1   : > { %v276_v54 = vmul.f32 0.5, %v275_v53  ;;  %v558_v53 = vld [vmem:[%s926_s1 + $0xe8] sm:$0xff] }
  0xa3   : > { %614 = vtanh.f32 %v276_v54 }
  0xad   : > { %v615_v55 = vpop.eup %614 }
  0xae   : > { %v278_v56 = vmul.f32 0.5, %v615_v55 }
  0xb0   : > { %v739_v57 = vadd.f32 0.5, %v278_v56  ;;  %v569_v56 = vld [vmem:[%s926_s1 + $0x140] sm:$0xff] }
  0xb2   : > { %307 = vrot.lane.b32.xlu1 %v739_v57, %s627_s22  ;;  %283 = vrot.lane.b32.xlu0 %v739_v57, %s625_s18  ;;  %s634_s18 = smov 125   ;;  %s636_s22 = smov 103   ;;  %v282_v41 = vmul.f32 %v549_v25, %v739_v57  ;;  %v530_v25 = vld [vmem:[%s926_s1 + $0x10] sm:$0xff] }
  0xb6   : > { %336 = vrot.lane.b32.xlu1 %v739_v57, %s629_s24  ;;  %312 = vrot.lane.b32.xlu0 %v739_v57, %s624_s17  ;;  %s635_s17 = smov 93  }
  0xba   : > { %365 = vrot.lane.b32.xlu1 %v739_v57, %s632_s30  ;;  %341 = vrot.lane.b32.xlu0 %v739_v57, %s630_s25 }
  0xbe   : > { %289 = vrot.lane.b32.xlu1 %v739_v57, %s626_s21  ;;  %370 = vrot.lane.b32.xlu0 %v739_v57, %s633_s3  ;;  %s638_s21 = smov 84  }
  0xc2   : > { %347 = vrot.lane.b32.xlu1 %v739_v57, %s631_s26  ;;  %318 = vrot.lane.b32.xlu0 %v739_v57, %s628_s23 }
  0xc6   : > { %295 = vrot.lane.b32.xlu1 %v739_v57, %s634_s18  ;;  %376 = vrot.lane.b32.xlu0 %v739_v57, %s635_s17 }
  0xca   : > { %353 = vrot.lane.b32.xlu1 %v739_v57, %s636_s22  ;;  %324 = vrot.lane.b32.xlu0 %v739_v57, %s637_s4 }
  0xce   : > { %394 = vrot.lane.b32.xlu1 %v739_v57, %s638_s21  ;;  %382 = vrot.lane.b32.xlu0 %v739_v57, %s639_s5 }
  0xd2   : > { %301 = vrot.lane.b32.xlu1 %v739_v57, %s640_s6  ;;  %399 = vrot.lane.b32.xlu0 %v739_v57, %s641_s7 }
  0xd6   : > { %359 = vrot.lane.b32.xlu1 %v739_v57, %s642_s8  ;;  %330 = vrot.lane.b32.xlu0 %v739_v57, %s643_s12 }
  0xda   : > { %405 = vrot.lane.b32.xlu1 %v739_v57, %s644_s13  ;;  %388 = vrot.lane.b32.xlu0 %v739_v57, %s645_s14 }
  0xde   : > { %417 = vrot.lane.b32.xlu1 %v739_v57, %s646_s15  ;;  %411 = vrot.lane.b32.xlu0 %v739_v57, %s647_s16 }
  0xe2   : > { %177 = vrot.lane.b32.xlu0 %v697_v15, %s628_s23  ;;  %183 = vrot.lane.b32.xlu1 %v697_v15, %s629_s24 }
  0xe6   : > { %188 = vrot.lane.b32.xlu0 %v697_v15, %s630_s25  ;;  %194 = vrot.lane.b32.xlu1 %v697_v15, %s631_s26 }
 0x124   : > { %v308_v62 = vpop.permute.xlu1 %307  ;;  %v284_v63 = vpop.permute.xlu0 %283 }
 0x125   : > { %v311_v31 = vmul.f32 %v554_v18, %v308_v62  ;;  %v287_v36 = vmul.f32 %v550_v19, %v284_v63 }
 0x127   : > { %v288_v62 = vadd.f32 %v287_v36, %v282_v41  ;;  %v535_v41 = vld [vmem:[%s926_s1 + $0x38] sm:$0xff] }
 0x128   : > { %v337_v0 = vpop.permute.xlu1 %336  ;;  %v313_v2 = vpop.permute.xlu0 %312 }
 0x129   : > { %v316_v22 = vmul.f32 %v555_v13, %v313_v2  ;;  %v340_v37 = vmul.f32 %v559_v21, %v337_v0 }
 0x12b   : > { %v317_v42 = vadd.f32 %v316_v22, %v311_v31  ;;  %v573_v31 = vld [vmem:[%s926_s1 + $0x160] sm:$0xff] }
 0x12c   : > { %v366_v3 = vpop.permute.xlu1 %365  ;;  %v342_v4 = vpop.permute.xlu0 %341 }
 0x12d   : > { %v345_v27 = vmul.f32 %v560_v17, %v342_v4  ;;  %v369_v43 = vmul.f32 %v564_v26, %v366_v3  ;;  %v553_v3 = vld [vmem:[%s926_s1 + $0xc0] sm:$0xff]  ;;  %v571_v4 = vld [vmem:[%s926_s1 + $0x150] sm:$0xff] }
 0x12f   : > { %v346_v46 = vadd.f32 %v345_v27, %v340_v37 }
 0x130   : > { %v290_v5 = vpop.permute.xlu1 %289  ;;  %v371_v6 = vpop.permute.xlu0 %370 }
 0x131   : > { %v374_v33 = vmul.f32 %v565_v20, %v371_v6  ;;  %v293_v47 = vmul.f32 %v551_v32, %v290_v5  ;;  %v568_v5 = vld [vmem:[%s926_s1 + $0x138] sm:$0xff] }
 0x133   : > { %v375_v55 = vadd.f32 %v374_v33, %v369_v43 }
 0x134   : > { %v348_v7 = vpop.permute.xlu1 %347  ;;  %v319_v8 = vpop.permute.xlu0 %318 }
 0x135   : > { %v351_v38 = vmul.f32 %v561_v23, %v348_v7  ;;  %v322_v39 = vmul.f32 %v556_v24, %v319_v8  ;;  %v572_v23 = vld [vmem:[%s926_s1 + $0x158] sm:$0xff]  ;;  %v533_v24 = vld [vmem:[%s926_s1 + $0x28] sm:$0xff] }
 0x137   : > { %v352_v63 = vadd.f32 %v351_v38, %v346_v46  ;;  %v323_v0 = vadd.f32 %v322_v39, %v317_v42  ;;  %v170_v38 = vmul.f32 %v533_v24, %v781_v58  ;;  %v153_v39 = vmul.f32 %v530_v25, %v697_v15  ;;  %v532_v46 = vld [vmem:[%s926_s1 + $0x20] sm:$0xff]  ;;  %v575_v25 = vld [vmem:[%s926_s1 + $0x178] sm:$0xff] }
 0x138   : > { %v296_v9 = vpop.permute.xlu1 %295  ;;  %v377_v10 = vpop.permute.xlu0 %376  ;;  %v576_v24 = vld [vmem:[%s926_s1 + $0x180] sm:$0xff] }
 0x139   : > { %v380_v45 = vmul.f32 %v566_v28, %v377_v10  ;;  %v299_v2 = vmul.f32 %v552_v44, %v296_v9 }
 0x13b   : > { %v381_v6 = vadd.f32 %v380_v45, %v375_v55 }
 0x13c   : > { %v354_v11 = vpop.permute.xlu1 %353  ;;  %v325_v12 = vpop.permute.xlu0 %324 }
 0x13d   : > { %v357_v48 = vmul.f32 %v562_v34, %v354_v11  ;;  %v328_v49 = vmul.f32 %v557_v35, %v325_v12  ;;  %v294_v11 = vadd.f32 %v293_v47, %v288_v62 }
 0x13f   : > { %v358_v12 = vadd.f32 %v357_v48, %v352_v63  ;;  %v329_v13 = vadd.f32 %v328_v49, %v323_v0  ;;  %v300_v22 = vadd.f32 %v299_v2, %v294_v11 }
 0x140   : > { %v395_v14 = vpop.permute.xlu1 %394  ;;  %v383_v16 = vpop.permute.xlu0 %382 }
 0x141   : > { %v386_v57 = vmul.f32 %v567_v40, %v383_v16  ;;  %v398_v9 = vmul.f32 %v569_v56, %v395_v14  ;;  %v531_v14 = vld [vmem:[%s926_s1 + $0x18] sm:$0xff] }
 0x142   : > { %v158_v40 = vmul.f32 %v531_v14, %v783_v59  ;;  %v536_v59 = vld [vmem:[%s926_s1 + $0x40] sm:$0xff] }
 0x143   : > { %v387_v18 = vadd.f32 %v386_v57, %v381_v6 }
 0x144   : > { %v302_v29 = vpop.permute.xlu1 %301  ;;  %v400_v30 = vpop.permute.xlu0 %399 }
 0x145   : > { %v403_v7 = vmul.f32 %v570_v50, %v400_v30  ;;  %v305_v19 = vmul.f32 %v553_v3, %v302_v29  ;;  %v534_v30 = vld [vmem:[%s926_s1 + $0x30] sm:$0xff] }
 0x146   : > { %v175_v42 = vmul.f32 %v534_v30, %v787_v61  ;;  %v537_v61 = vld [vmem:[%s926_s1 + $0x48] sm:$0xff]  ;;  %v538_v50 = vld [vmem:[%s926_s1 + $0x50] sm:$0xff] }
 0x147   : > { %v404_v26 = vadd.f32 %v403_v7, %v398_v9  ;;  %v306_v34 = vadd.f32 %v305_v19, %v300_v22 }
 0x148   : > { %v360_v52 = vpop.permute.xlu1 %359  ;;  %v331_v54 = vpop.permute.xlu0 %330 }
 0x149   : > { %v363_v8 = vmul.f32 %v563_v51, %v360_v52  ;;  %v334_v10 = vmul.f32 %v558_v53, %v331_v54  ;;  %v159_v51 = vadd.f32 %v158_v40, %v153_v39  ;;  %v164_v52 = vmul.f32 %v532_v46, %v785_v60 }
 0x14a   : > { %v176_v53 = vadd.f32 %v175_v42, %v170_v38 }
 0x14b   : > { %v364_v27 = vadd.f32 %v363_v8, %v358_v12  ;;  %v335_v28 = vadd.f32 %v334_v10, %v329_v13 }
 0x14c   : > { %v406_v16 = vpop.permute.xlu1 %405  ;;  %v389_v17 = vpop.permute.xlu0 %388 }
 0x14d   : > { %v409_v20 = vmul.f32 %v571_v4, %v406_v16  ;;  %v392_v21 = vmul.f32 %v568_v5, %v389_v17  ;;  %v423_v43 = vadd.f32 %v335_v28, %v306_v34  ;;  %v165_v4 = vadd.f32 %v164_v52, %v159_v51  ;;  %v574_v16 = vld [vmem:[%s926_s1 + $0x170] sm:$0xff]  ;;  %v579_v34 = vld [vmem:[%s926_s1 + $0x198] sm:$0xff] }
 0x14f   : > { %v393_v29 = vadd.f32 %v392_v21, %v387_v18  ;;  %v410_v35 = vadd.f32 %v409_v20, %v404_v26  ;;  %v445_v20 = vsub.s32 0, %v673_v1 }
 0x150   : > { %v418_v32 = vpop.permute.xlu1 %417  ;;  %v412_v33 = vpop.permute.xlu0 %411 }
 0x151   : > { %v424_v36 = vadd.f32 %v393_v29, %v364_v27  ;;  %v415_v37 = vmul.f32 %v572_v23, %v412_v33  ;;  %v421_v44 = vmul.f32 %v573_v31, %v418_v32  ;;  %v577_v29 = vld [vmem:[%s926_s1 + $0x190] sm:$0xff]  ;;  %v578_v31 = vld [vmem:[%s926_s1 + $0x188] sm:$0xff] }
 0x153   : > { %v416_v45 = vadd.f32 %v415_v37, %v410_v35  ;;  %v425_v58 = vadd.f32 %v424_v36, %v423_v43 }
 0x154   : > { %v178_v47 = vpop.permute.xlu0 %177  ;;  %v184_v48 = vpop.permute.xlu1 %183 }
 0x155   : > { %v422_v49 = vadd.f32 %v421_v44, %v416_v45  ;;  %v181_v15 = vmul.f32 %v535_v41, %v178_v47  ;;  %v187_v55 = vmul.f32 %v536_v59, %v184_v48 }
 0x157   : > { %v426_v54 = vadd.f32 %v425_v58, %v422_v49  ;;  %v182_v63 = vadd.f32 %v181_v15, %v176_v53 }
 0x158   : > { %v189_v56 = vpop.permute.xlu0 %188  ;;  %v195_v57 = vpop.permute.xlu1 %194 }
 0x159   : > { %v427_v62 = vsel %vm216_vm0, %v426_v54, 0.0  ;;  %v192_v0 = vmul.f32 %v537_v61, %v189_v56  ;;  %v198_v2 = vmul.f32 %v538_v50, %v195_v57  ;;  %v200_v7 = vadd.f32 %v182_v63, %v165_v4 }
 0x15a   : > { %v428_v3 = vrot.slane %v427_v62, 4 }
 0x15b   : > { %v193_v5 = vadd.f32 %v192_v0, %v187_v55 }
 0x15c   : > { %v429_v6 = vadd.f32 %v428_v3, %v427_v62 }
 0x15d   : > { %v199_v8 = vadd.f32 %v198_v2, %v193_v5 }
 0x15e   : > { %v430_v10 = vrot.slane %v429_v6, 2 }
 0x15f   : > { %v201_v11 = vadd.f32 %v200_v7, %v199_v8 }
 0x160   : > { %v431_v12 = vadd.f32 %v430_v10, %v429_v6 }
 0x161   : > { %v202_v60 = vrot.slane %v201_v11, 4 }
 0x162   : > { %v432_v13 = vrot.slane %v431_v12, 1 }
 0x163   : > { %v203_v9 = vadd.f32 %v202_v60, %v201_v11 }
 0x164   : > { %v433_v17 = vadd.f32 %v432_v13, %v431_v12 }
 0x165   : > { %v204_v18 = vrot.slane %v203_v9, 2 }
 0x166   : > { %v436_v19 = vadd.f32 %v574_v16, %v433_v17 }
 0x167   : > { %v205_v21 = vadd.f32 %v204_v18, %v203_v9 }
 0x168   : > { %v437_v22 = vmax.f32 %v436_v19, 0.0 }
 0x169   : > { %v206_v23 = vrot.slane %v205_v21, 1 }
 0x16a   : > { %v446_v14 = vrot.slane %v437_v22, %v445_v20 }
 0x16b   : > { %v207_v26 = vadd.f32 %v206_v23, %v205_v21 }
 0x16c   : > { %v447_v27 = vmul.f32 %v576_v24, %v446_v14 }
 0x16d   : > { %v440_v28 = vmul.f32 %v575_v25, %v207_v26 }
 0x16f   : > { %v448_v1 = vadd.f32 %v447_v27, %v440_v28 }
 0x171   : > { %v451_v30 = vadd.f32 %v577_v29, %v448_v1 }
 0x173   : > { %452 = vadd.xlane.f32.xlu0 %v451_v30 }
 0x200   : > { %v453_v32 = vpop.xlane.xlu0 %452 }
 0x201   : > { %v454_v33 = vmax.f32 %v453_v32, 0.0 }
 0x203   : > { %v457_v35 = vmul.f32 %v578_v31, %v454_v33 }
 0x205   : > { %v460_v36 = vadd.f32 %v579_v34, %v457_v35 }
 0x207   : > { %v461_v37 = vrot.slane %v460_v36, 4 }
 0x209   : > { %v462_v38 = vadd.f32 %v461_v37, %v460_v36 }
 0x20b   : > { %v463_v39 = vrot.slane %v462_v38, 2 }
 0x20d   : > { %v464_v40 = vadd.f32 %v463_v39, %v462_v38 }
 0x20f   : > { %v465_v41 = vrot.slane %v464_v40, 1 }
 0x211   : > { %v466_v42 = vadd.f32 %v465_v41, %v464_v40 }
 0x213   : > { %v467_v43 = vmax.f32 %v466_v42, 0.0 }
 0x215   : > { %468 = vst [vmem:[%s138_s28] sm:$0xff] %v467_v43 }
 0x216 PF: > { %s12_s9 = sadd.s32 1, %s622_s9  }
 0x217   : > { %p9_p4 = scmp.ge.s32.totalorder %s12_s9, 6  }
 0x219   :  { %11 = sbr.rel (!%p9_p4) target bundleno = 1 (0x1), region = 109 }

</bundles_post_ra>
